<compile_context>
chip_gen: v7x
topology: tpu7x:2x2x1
jax: 0.10.0
libtpu: 0.0.40
codegen_flags: <defaults>
</compile_context>

<pallas_src>
import functools
import math

import jax
import jax.numpy as jnp
from jax import lax
from jax.experimental import pallas as pl
from jax.experimental.pallas import tpu as pltpu


def _round_up(v, m):
    return ((v + m - 1) // m) * m


def _cdiv(a, b):
    return -(-a // b)


def _shifted_tap(x_blk, halo_blk, lane_ids, q, l_tile, hw):
    """merged[:, i] = x_blk[:, i+q] for i < l_tile-q, else halo_blk[:, i-(l_tile-q)].

    One XLU roll of the full-width tile + one XLU roll of the lane-aligned halo +
    a VPU select; no lane-misaligned partial loads/stores.
    """
    if q == 0:
        return x_blk
    rolled_x = pltpu.roll(x_blk, shift=l_tile - q, axis=1)
    rolled_h = pltpu.roll(halo_blk, shift=(hw - q) % hw, axis=1)
    if hw != l_tile:
        rolled_h = jnp.tile(rolled_h, (1, l_tile // hw))
    return jnp.where(lane_ids >= l_tile - q, rolled_h, rolled_x)


def _conv1d_im2col_kernel(x_ref, halo_ref, w_ref, b_ref, o_ref, col_ref, *,
                          k_size, stride, dilation, icg, l_tile, hw):
    # x_ref:    (1, stride, 1, icg, l_tile)   phase-decomposed input tile (this group)
    # halo_ref: (1, stride, 1, icg, hw)       lane-aligned right halo (view of x)
    # w_ref:    (1, ocg, k_size * icg)        weight, columns ordered (k, ic)
    # b_ref:    (1, ocg, 1)
    # o_ref:    (1, 1, ocg, l_tile)
    # col_ref:  (k_size * icg, l_tile)        im2col scratch (input dtype)
    lane = lax.broadcasted_iota(jnp.int32, (icg, l_tile), 1)
    # TODO(synk): sublane-pad icg (to 8/f32) so k*icg row offsets are tile-aligned.
    for k in range(k_size):
        off = k * dilation
        p, q = off % stride, off // stride
        col_ref[k * icg:(k + 1) * icg, :] = _shifted_tap(
            x_ref[0, p, 0], halo_ref[0, p, 0], lane, q, l_tile, hw)
    acc = jnp.dot(w_ref[0], col_ref[...], preferred_element_type=jnp.float32)
    o_ref[0, 0] = (acc + b_ref[0]).astype(o_ref.dtype)


def _conv1d_direct_kernel(x_ref, halo_ref, w_ref, b_ref, o_ref, *,
                          k_size, stride, dilation, icg, l_tile, hw):
    # Deep-tap path (icg >= 128 or k_size == 1): no im2col scratch, K per-tap matmuls
    # accumulated in registers (compiler spills to VMEM only if needed).
    # w_ref: (1, k_size, ocg, icg)
    lane = lax.broadcasted_iota(jnp.int32, (icg, l_tile), 1)
    acc = None
    for k in range(k_size):
        off = k * dilation
        p, q = off % stride, off // stride
        tap = _shifted_tap(x_ref[0, p, 0], halo_ref[0, p, 0], lane, q, l_tile, hw)
        part = jnp.dot(w_ref[0, k], tap, preferred_element_type=jnp.float32)
        acc = part if acc is None else acc + part
    o_ref[0, 0] = (acc + b_ref[0]).astype(o_ref.dtype)


def _conv1d_depthwise_kernel(x_ref, halo_ref, w_ref, b_ref, o_ref, *,
                             k_size, stride, dilation, c, l_tile, hw):
    # Depthwise (groups == C_in == C_out): VPU broadcast-MACs, f32 register accumulator
    # (no per-tap VMEM round trip), single store at the end.
    # x_ref: (1, stride, c, l_tile); halo_ref: (1, stride, c, hw)
    # w_ref: (c, k_size); b_ref: (c, 1); o_ref: (1, c, l_tile)
    lane = lax.broadcasted_iota(jnp.int32, (c, l_tile), 1)
    acc = None
    for k in range(k_size):
        off = k * dilation
        p, q = off % stride, off // stride
        tap = _shifted_tap(x_ref[0, p], halo_ref[0, p], lane, q, l_tile, hw)
        term = w_ref[:, k:k + 1].astype(jnp.float32) * tap.astype(jnp.float32)
        acc = term if acc is None else acc + term
    o_ref[0] = (acc + b_ref[...].astype(jnp.float32)).astype(o_ref.dtype)


def tf_conv1d(x, weight, bias=None, *, stride=1, padding="same", dilation=1,
              groups=1, l_tile=None):
    """Forward pass of TfConv1d. x: (N, C_in, L) -> (N, C_out, L_out)."""
    if padding not in ("same", "valid"):
        raise ValueError("padding must be same or valid")
    n, c_in, in_rows = x.shape
    c_out, icg, k_size = weight.shape
    if c_in % groups or c_out % groups or icg != c_in // groups:
        raise ValueError("bad channel/group configuration")
    ocg = c_out // groups

    # --- TF-style padding (identical to the PyTorch module) -----------------------
    if padding == "valid":
        padding_rows, rows_odd = 0, False
    else:
        out_rows = (in_rows + stride - 1) // stride
        padding_rows = max(
            0, (out_rows - 1) * stride + (k_size - 1) * dilation + 1 - in_rows)
        rows_odd = (padding_rows % 2) != 0
    left = padding_rows // 2
    right = left + (1 if rows_odd else 0)
    l_pad = in_rows + left + right
    l_out = (l_pad - dilation * (k_size - 1) - 1) // stride + 1
    if l_out < 1:
        raise ValueError("input too short for this kernel/dilation")

    depthwise = (groups > 1) and (groups == c_in) and (groups == c_out)

    # Few tiny, sublane-unaligned groups: fold into one block-diagonal dense conv
    # (one large-M matmul instead of many tiny ones; ~groups x wasted FLOPs, cheap here).
    if (not depthwise) and groups > 1 and (icg % 8 or ocg % 8) and groups <= 16:
        wd = jnp.zeros((c_out, c_in, k_size), weight.dtype)
        for g in range(groups):
            wd = wd.at[g * ocg:(g + 1) * ocg, g * icg:(g + 1) * icg, :].set(
                weight[g * ocg:(g + 1) * ocg])
        weight = wd
        groups, icg, ocg = 1, c_in, c_out

    itemsize = jnp.dtype(x.dtype).itemsize

    # Phase-space geometry: tap k reads phase (k*d) % s at phase-offset (k*d) // s.
    q_max = ((k_size - 1) * dilation) // stride
    # Lane-aligned halo width; must divide l_tile so the halo BlockSpec indexes cleanly.
    hw = _round_up(max(q_max, 1), 128)

    # --- generation-aware VMEM budgets (v5e/v6e: 128 MiB, v7x: 64 MiB per core) ----
    try:
        vmem_cap = int(pltpu.get_tpu_info().vmem_capacity_bytes)
    except Exception:
        vmem_cap = 64 * 2 ** 20            # conservative (v7x-sized) fallback
    big_vmem = vmem_cap >= 96 * 2 ** 20
    tile_budget = (48 if big_vmem else 24) * 2 ** 20
    limit_cap = min(vmem_cap * 3 // 4, 100 * 2 ** 20)
    l_tile_cap = 2048 if big_vmem else 512

    # Skip the im2col scratch when every tap is already MXU-deep.
    direct = (not depthwise) and (icg >= 128 or k_size == 1)

    def _vmem_est(tl):
        cin_blk = c_in if depthwise else icg
        cout_blk = c_out if depthwise else ocg
        xb = stride * cin_blk * tl * itemsize            # input tile
        hb = stride * cin_blk * hw * itemsize            # lane-aligned halo tile
        ob = cout_blk * tl * itemsize                    # output tile
        wb = cout_blk * (k_size * (1 if depthwise else icg) + 1) * itemsize
        sc = 0 if (depthwise or direct) else k_size * icg * tl * itemsize
        return 2 * (xb + hb + ob + wb) + sc              # double-buffered + scratch

    # --- output-length tile: lane dense, multiple of hw, VMEM-budgeted -------------
    if l_tile is None:
        l_tile = min(l_tile_cap, _round_up(l_out, 128))
        l_tile = _round_up(max(l_tile, hw), hw)
        while l_tile > hw and _vmem_est(l_tile) > tile_budget:
            l_tile -= hw
    else:
        l_tile = _round_up(max(l_tile, hw), hw)
    est = _vmem_est(l_tile)
    if est > limit_cap:
        raise ValueError(
            f"TfConv1d tile needs ~{est >> 20} MiB VMEM, more than the "
            f"{limit_cap >> 20} MiB usable on this TPU generation")
    vmem_limit = int(min(limit_cap, max(32 * 2 ** 20, est + (8 << 20))))

    num_l = _cdiv(l_out, l_tile)
    ratio = l_tile // hw

    # --- wrapper-side layout: pad + space-to-depth (stride -> phase axis) ----------
    n_blk = max(num_l, _cdiv(_cdiv(l_pad, stride), l_tile))
    l_ph = (n_blk + 1) * l_tile                 # phase-space length (per phase)
    total = stride * l_ph                       # padded length in the original domain
    x_ext = jnp.pad(x, ((0, 0), (0, 0), (left, total - in_rows - left)))
    # x_sd[b, p, c, i] = x_padded[b, c, i * stride + p]
    # TODO(synk): for stride > 1 this space-to-depth transpose is an extra HBM pass;
    # folding it into the kernel's input DMA (allow_input_fusion) is not attempted here.
    x_sd = jnp.transpose(x_ext.reshape(n, c_in, l_ph, stride), (0, 3, 1, 2))

    if bias is None:
        bias = jnp.zeros((c_out,), dtype=x.dtype)

    cost = pl.CostEstimate(
        flops=2 * n * l_out * c_out * (1 if depthwise else icg) * k_size,
        transcendentals=0,
        bytes_accessed=int(n * c_in * l_pad * itemsize
                           + weight.size * jnp.dtype(weight.dtype).itemsize
                           + n * c_out * l_out * itemsize))

    if depthwise:
        kernel = functools.partial(
            _conv1d_depthwise_kernel, k_size=k_size, stride=stride,
            dilation=dilation, c=c_out, l_tile=l_tile, hw=hw)
        out_padded = pl.pallas_call(
            kernel,
            out_shape=jax.ShapeDtypeStruct((n, c_out, num_l * l_tile), x.dtype),
            grid_spec=pltpu.PrefetchScalarGridSpec(
                num_scalar_prefetch=0,
                grid=(n, num_l),
                in_specs=[
                    pl.BlockSpec((1, stride, c_in, l_tile),
                                 lambda b, j: (b, 0, 0, j)),
                    pl.BlockSpec((1, stride, c_in, hw),
                                 lambda b, j: (b, 0, 0, (j + 1) * ratio)),
                    pl.BlockSpec((c_out, k_size), lambda b, j: (0, 0)),
                    pl.BlockSpec((c_out, 1), lambda b, j: (0, 0)),
                ],
                out_specs=pl.BlockSpec((1, c_out, l_tile), lambda b, j: (b, 0, j)),
            ),
            compiler_params=pltpu.CompilerParams(
                dimension_semantics=("parallel", "parallel"),
                vmem_limit_bytes=vmem_limit),
            cost_estimate=cost,
        )(x_sd, x_sd, weight.reshape(c_out, k_size), bias.reshape(c_out, 1))
        return out_padded[:, :, :l_out]

    # ---- dense / grouped matmul path: grid over (batch, groups, L-tiles) ----------
    x_sd5 = x_sd.reshape(n, stride, groups, icg, l_ph)        # free (contiguous split)
    w4 = weight.reshape(groups, ocg, icg, k_size)
    b3 = bias.reshape(groups, ocg, 1)

    if direct:
        w_in = jnp.transpose(w4, (0, 3, 1, 2))                # (G, K, ocg, icg)
        w_spec = pl.BlockSpec((1, k_size, ocg, icg), lambda b, g, j: (g, 0, 0, 0))
        kernel = functools.partial(
            _conv1d_direct_kernel, k_size=k_size, stride=stride,
            dilation=dilation, icg=icg, l_tile=l_tile, hw=hw)
        scratch = []
    else:
        w_in = jnp.transpose(w4, (0, 1, 3, 2)).reshape(groups, ocg, k_size * icg)
        w_spec = pl.BlockSpec((1, ocg, k_size * icg), lambda b, g, j: (g, 0, 0))
        kernel = functools.partial(
            _conv1d_im2col_kernel, k_size=k_size, stride=stride,
            dilation=dilation, icg=icg, l_tile=l_tile, hw=hw)
        scratch = [pltpu.VMEM((k_size * icg, l_tile), x.dtype)]

    out_padded = pl.pallas_call(
        kernel,
        out_shape=jax.ShapeDtypeStruct((n, groups, ocg, num_l * l_tile), x.dtype),
        grid_spec=pltpu.PrefetchScalarGridSpec(
            num_scalar_prefetch=0,
            grid=(n, groups, num_l),
            in_specs=[
                pl.BlockSpec((1, stride, 1, icg, l_tile),
                             lambda b, g, j: (b, 0, g, 0, j)),
                pl.BlockSpec((1, stride, 1, icg, hw),
                             lambda b, g, j: (b, 0, g, 0, (j + 1) * ratio)),
                w_spec,
                pl.BlockSpec((1, ocg, 1), lambda b, g, j: (g, 0, 0)),
            ],
            out_specs=pl.BlockSpec((1, 1, ocg, l_tile),
                                   lambda b, g, j: (b, g, 0, j)),
            scratch_shapes=scratch,
        ),
        compiler_params=pltpu.CompilerParams(
            dimension_semantics=("parallel", "parallel", "parallel"),
            vmem_limit_bytes=vmem_limit),
        cost_estimate=cost,
    )(x_sd5, x_sd5, w_in, b3)
    return out_padded.reshape(n, c_out, num_l * l_tile)[:, :, :l_out]


def _reference_conv1d(x, weight, bias, *, stride, padding, dilation, groups):
    """Pure-JAX reference mirroring the PyTorch forward (for validation)."""
    n, c_in, in_rows = x.shape
    c_out, icg, k_size = weight.shape
    if padding == "valid":
        padding_rows, rows_odd = 0, False
    else:
        out_rows = (in_rows + stride - 1) // stride
        padding_rows = max(
            0, (out_rows - 1) * stride + (k_size - 1) * dilation + 1 - in_rows)
        rows_odd = (padding_rows % 2) != 0
    left = padding_rows // 2
    right = left + (1 if rows_odd else 0)
    out = lax.conv_general_dilated(
        x, weight,
        window_strides=(stride,),
        padding=[(left, right)],
        rhs_dilation=(dilation,),
        feature_group_count=groups,
        dimension_numbers=("NCH", "OIH", "NCH"),
        precision=lax.Precision.HIGHEST)
    if bias is not None:
        out = out + bias.reshape(1, c_out, 1)
    return out


if __name__ == "__main__":
    key = jax.random.PRNGKey(0)

    # (N, C_in, C_out, L, K, stride, dilation, groups, padding)
    configs = [
        (2, 4, 8, 16, 3, 1, 1, 1, "same"),      # dense conv, im2col MXU path
        (1, 8, 8, 21, 4, 2, 1, 2, "valid"),     # strided tiny groups -> block-diag fold
        (2, 8, 8, 20, 3, 1, 2, 8, "same"),      # dilated depthwise, VPU path
        (1, 128, 16, 256, 3, 1, 1, 1, "same"),  # deep taps -> direct per-tap matmuls
        (2, 32, 32, 64, 5, 1, 1, 2, "same"),    # aligned groups -> grid over groups
    ]
    for idx, (N, C_IN, C_OUT, L, K, S, D, G, PAD) in enumerate(configs):
        key, kx, kw, kb = jax.random.split(key, 4)
        # Init bounds matching the PyTorch module (kaiming_uniform_(a=sqrt(5)) + bias).
        fan_in = (C_IN // G) * K
        bound = 1.0 / math.sqrt(fan_in)
        weight = jax.random.uniform(kw, (C_OUT, C_IN // G, K), jnp.float32,
                                    -bound, bound)
        bias = jax.random.uniform(kb, (C_OUT,), jnp.float32, -bound, bound)
        x = jax.random.normal(kx, (N, C_IN, L), jnp.float32)

        out = tf_conv1d(x, weight, bias, stride=S, padding=PAD, dilation=D, groups=G)
        out = jax.block_until_ready(out)

        ref = _reference_conv1d(x, weight, bias, stride=S, padding=PAD,
                                dilation=D, groups=G)
        assert out.shape == ref.shape, (idx, out.shape, ref.shape)
        assert jnp.allclose(out, ref, atol=1e-4, rtol=1e-4), f"mismatch in config {idx}"

    print("KERNEL_OK")
</pallas_src>

<mosaic_0001>
module attributes {stable_mosaic.version = 11 : i64} {
  func.func @_conv1d_im2col_kernel(%arg0: i32, %arg1: i32, %arg2: i32, %arg3: memref<1x1x1x4x128xf32, #tpu.memory_space<vmem>>, %arg4: memref<1x1x1x4x128xf32, #tpu.memory_space<vmem>>, %arg5: memref<1x8x12xf32, #tpu.memory_space<vmem>>, %arg6: memref<1x8x1xf32, #tpu.memory_space<vmem>>, %arg7: memref<1x1x8x128xf32, #tpu.memory_space<vmem>>, %arg8: memref<12x128xf32, #tpu.memory_space<vmem>>) attributes {dimension_semantics = [#tpu.dimension_semantics<parallel>, #tpu.dimension_semantics<parallel>, #tpu.dimension_semantics<parallel>], iteration_bounds = array<i64: 2, 1, 1>, scalar_prefetch = 0 : i64, scratch_operands = 1 : i64, tpu.core_type = #tpu.core_type<tc>, window_params = [{transform_indices = @transform_0, window_bounds = array<i64: 1, 1, 1, 4, 128>}, {transform_indices = @transform_1, window_bounds = array<i64: 1, 1, 1, 4, 128>}, {transform_indices = @transform_2, window_bounds = array<i64: 1, 8, 12>}, {transform_indices = @transform_3, window_bounds = array<i64: 1, 8, 1>}, {transform_indices = @transform_4, window_bounds = array<i64: 1, 1, 8, 128>}]} {
    %0 = tpu.iota {dimensions = array<i32: 1>} : vector<4x128xi32>
    %c0 = arith.constant 0 : index
    %c0_0 = arith.constant 0 : index
    %c0_1 = arith.constant 0 : index
    %c0_2 = arith.constant 0 : index
    %c0_3 = arith.constant 0 : index
    %1 = vector.load %arg3[%c0, %c0_0, %c0_1, %c0_2, %c0_3] : memref<1x1x1x4x128xf32, #tpu.memory_space<vmem>>, vector<1x1x1x4x128xf32>
    %2 = vector.shape_cast %1 : vector<1x1x1x4x128xf32> to vector<4x128xf32>
    %c0_4 = arith.constant 0 : index
    %c0_5 = arith.constant 0 : index
    %3 = vector.load %arg8[%c0_4, %c0_5] : memref<12x128xf32, #tpu.memory_space<vmem>>, vector<4x128xf32>
    tpu.vector_store %arg8[%c0_4, %c0_5], %2 {strides = array<i32>} : memref<12x128xf32, #tpu.memory_space<vmem>>, vector<4x128xf32>,
    %c0_6 = arith.constant 0 : index
    %c0_7 = arith.constant 0 : index
    %c0_8 = arith.constant 0 : index
    %c0_9 = arith.constant 0 : index
    %c0_10 = arith.constant 0 : index
    %4 = vector.load %arg3[%c0_6, %c0_7, %c0_8, %c0_9, %c0_10] : memref<1x1x1x4x128xf32, #tpu.memory_space<vmem>>, vector<1x1x1x4x128xf32>
    %5 = vector.shape_cast %4 : vector<1x1x1x4x128xf32> to vector<4x128xf32>
    %c0_11 = arith.constant 0 : index
    %c0_12 = arith.constant 0 : index
    %c0_13 = arith.constant 0 : index
    %c0_14 = arith.constant 0 : index
    %c0_15 = arith.constant 0 : index
    %6 = vector.load %arg4[%c0_11, %c0_12, %c0_13, %c0_14, %c0_15] : memref<1x1x1x4x128xf32, #tpu.memory_space<vmem>>, vector<1x1x1x4x128xf32>
    %7 = vector.shape_cast %6 : vector<1x1x1x4x128xf32> to vector<4x128xf32>
    %c127_i32 = arith.constant 127 : i32
    %8 = tpu.dynamic_rotate %5 by %c127_i32 dim 1 : vector<4x128xf32>, i32 -> vector<4x128xf32>
    %c127_i32_16 = arith.constant 127 : i32
    %9 = tpu.dynamic_rotate %7 by %c127_i32_16 dim 1 : vector<4x128xf32>, i32 -> vector<4x128xf32>
    %c127_i32_17 = arith.constant 127 : i32
    %10 = vector.broadcast %c127_i32_17 : i32 to vector<4x128xi32>
    %11 = arith.cmpi sge, %0, %10 : vector<4x128xi32>
    %12 = arith.select %11, %9, %8 : vector<4x128xi1>, vector<4x128xf32>
    %c4 = arith.constant 4 : index
    %c0_18 = arith.constant 0 : index
    %13 = vector.load %arg8[%c4, %c0_18] : memref<12x128xf32, #tpu.memory_space<vmem>>, vector<4x128xf32>
    tpu.vector_store %arg8[%c4, %c0_18], %12 {strides = array<i32>} : memref<12x128xf32, #tpu.memory_space<vmem>>, vector<4x128xf32>,
    %c0_19 = arith.constant 0 : index
    %c0_20 = arith.constant 0 : index
    %c0_21 = arith.constant 0 : index
    %c0_22 = arith.constant 0 : index
    %c0_23 = arith.constant 0 : index
    %14 = vector.load %arg3[%c0_19, %c0_20, %c0_21, %c0_22, %c0_23] : memref<1x1x1x4x128xf32, #tpu.memory_space<vmem>>, vector<1x1x1x4x128xf32>
    %15 = vector.shape_cast %14 : vector<1x1x1x4x128xf32> to vector<4x128xf32>
    %c0_24 = arith.constant 0 : index
    %c0_25 = arith.constant 0 : index
    %c0_26 = arith.constant 0 : index
    %c0_27 = arith.constant 0 : index
    %c0_28 = arith.constant 0 : index
    %16 = vector.load %arg4[%c0_24, %c0_25, %c0_26, %c0_27, %c0_28] : memref<1x1x1x4x128xf32, #tpu.memory_space<vmem>>, vector<1x1x1x4x128xf32>
    %17 = vector.shape_cast %16 : vector<1x1x1x4x128xf32> to vector<4x128xf32>
    %c126_i32 = arith.constant 126 : i32
    %18 = tpu.dynamic_rotate %15 by %c126_i32 dim 1 : vector<4x128xf32>, i32 -> vector<4x128xf32>
    %c126_i32_29 = arith.constant 126 : i32
    %19 = tpu.dynamic_rotate %17 by %c126_i32_29 dim 1 : vector<4x128xf32>, i32 -> vector<4x128xf32>
    %c126_i32_30 = arith.constant 126 : i32
    %20 = vector.broadcast %c126_i32_30 : i32 to vector<4x128xi32>
    %21 = arith.cmpi sge, %0, %20 : vector<4x128xi32>
    %22 = arith.select %21, %19, %18 : vector<4x128xi1>, vector<4x128xf32>
    %c8 = arith.constant 8 : index
    %c0_31 = arith.constant 0 : index
    %23 = vector.load %arg8[%c8, %c0_31] : memref<12x128xf32, #tpu.memory_space<vmem>>, vector<4x128xf32>
    tpu.vector_store %arg8[%c8, %c0_31], %22 {strides = array<i32>} : memref<12x128xf32, #tpu.memory_space<vmem>>, vector<4x128xf32>,
    %c0_32 = arith.constant 0 : index
    %c0_33 = arith.constant 0 : index
    %c0_34 = arith.constant 0 : index
    %24 = vector.load %arg5[%c0_32, %c0_33, %c0_34] : memref<1x8x12xf32, #tpu.memory_space<vmem>>, vector<1x8x12xf32>
    %25 = vector.shape_cast %24 : vector<1x8x12xf32> to vector<8x12xf32>
    %c0_35 = arith.constant 0 : index
    %c0_36 = arith.constant 0 : index
    %26 = vector.load %arg8[%c0_35, %c0_36] : memref<12x128xf32, #tpu.memory_space<vmem>>, vector<12x128xf32>
    %cst = arith.constant dense<0.000000e+00> : vector<8x128xf32>
    %27 = tpu.matmul %25, %26, %cst {dimension_numbers = #tpu.dot_dimension_numbers<[1], [0], [0], [1], [0, 0, 1, 1], [], []>} : vector<8x12xf32>, vector<12x128xf32>, vector<8x128xf32> -> vector<8x128xf32>
    %c0_37 = arith.constant 0 : index
    %c0_38 = arith.constant 0 : index
    %c0_39 = arith.constant 0 : index
    %28 = vector.load %arg6[%c0_37, %c0_38, %c0_39] : memref<1x8x1xf32, #tpu.memory_space<vmem>>, vector<1x8x1xf32>
    %29 = vector.shape_cast %28 : vector<1x8x1xf32> to vector<8x1xf32>
    %30 = vector.broadcast %29 : vector<8x1xf32> to vector<8x128xf32>
    %31 = arith.addf %27, %30 : vector<8x128xf32>
    %c0_40 = arith.constant 0 : index
    %c0_41 = arith.constant 0 : index
    %c0_42 = arith.constant 0 : index
    %c0_43 = arith.constant 0 : index
    %32 = vector.load %arg7[%c0_40, %c0_41, %c0_42, %c0_43] : memref<1x1x8x128xf32, #tpu.memory_space<vmem>>, vector<1x1x8x128xf32>
    %33 = vector.shape_cast %32 : vector<1x1x8x128xf32> to vector<8x128xf32>
    %34 = vector.shape_cast %31 : vector<8x128xf32> to vector<1x1x8x128xf32>
    tpu.vector_store %arg7[%c0_40, %c0_41, %c0_42, %c0_43], %34 {strides = array<i32>} : memref<1x1x8x128xf32, #tpu.memory_space<vmem>>, vector<1x1x8x128xf32>,
    return
  }
  func.func @transform_0(%arg0: i32, %arg1: i32, %arg2: i32) -> (i32, i32, i32, i32, i32) {
    %c0_i32 = arith.constant 0 : i32
    %c0_i32_0 = arith.constant 0 : i32
    %c0_i32_1 = arith.constant 0 : i32
    return %arg0, %c0_i32, %arg1, %c0_i32_0, %arg2 : i32, i32, i32, i32, i32
  }
  func.func @transform_1(%arg0: i32, %arg1: i32, %arg2: i32) -> (i32, i32, i32, i32, i32) {
    %c1_i32 = arith.constant 1 : i32
    %0 = arith.addi %arg2, %c1_i32 : i32
    %c1_i32_0 = arith.constant 1 : i32
    %1 = arith.muli %0, %c1_i32_0 : i32
    %c0_i32 = arith.constant 0 : i32
    %c0_i32_1 = arith.constant 0 : i32
    %c0_i32_2 = arith.constant 0 : i32
    return %arg0, %c0_i32, %arg1, %c0_i32_1, %1 : i32, i32, i32, i32, i32
  }
  func.func @transform_2(%arg0: i32, %arg1: i32, %arg2: i32) -> (i32, i32, i32) {
    %c0_i32 = arith.constant 0 : i32
    %c0_i32_0 = arith.constant 0 : i32
    %c0_i32_1 = arith.constant 0 : i32
    return %arg1, %c0_i32, %c0_i32_0 : i32, i32, i32
  }
  func.func @transform_3(%arg0: i32, %arg1: i32, %arg2: i32) -> (i32, i32, i32) {
    %c0_i32 = arith.constant 0 : i32
    %c0_i32_0 = arith.constant 0 : i32
    %c0_i32_1 = arith.constant 0 : i32
    return %arg1, %c0_i32, %c0_i32_0 : i32, i32, i32
  }
  func.func @transform_4(%arg0: i32, %arg1: i32, %arg2: i32) -> (i32, i32, i32, i32) {
    %c0_i32 = arith.constant 0 : i32
    %c0_i32_0 = arith.constant 0 : i32
    return %arg0, %arg1, %c0_i32, %arg2 : i32, i32, i32, i32
  }
}

</mosaic_0001>

<bundles_post_ra>
// kernel: tpu_custom_call.1
= control target key start
LH: loop header
LB: loop body
LE: loop exit
PB: predicated region body
PF: predicated region fallthrough
CT: control target
= control target key end

     0   :  { %9 = vsyncpa [#allocation4], 0  ;;  %s1121_s0 = inlined_call_operand.hbm [shape: f32[2,1,1,4,256], index: 0, kind: input, shape index: {}]   ;;  %s1122_s1 = inlined_call_operand.hbm [shape: f32[2,1,1,4,256], index: 1, kind: input, shape index: {}]   ;;  %s1123_s2 = inlined_call_operand.vmem [shape: f32[1,8,12], index: 2, kind: input, shape index: {}]   ;;  %s1124_s3 = inlined_call_operand.vmem [shape: f32[1,8,1], index: 3, kind: input, shape index: {}]   ;;  %s1125_s4 = inlined_call_operand.hbm [shape: f32[2,1,8,128], index: 4, kind: output, shape index: {}]  }
   0x1   :  { %11 = vsyncpa [#allocation4 + $0x1], 0 }
   0x2   :  { %12 = vsyncpa [#allocation7], 0 }
   0x3   :  { %14 = vsyncpa [#allocation7 + $0x1], 0 }
   0x4   :  { %15 = vsyncpa [#allocation5], 0 }
   0x5   :  { %17 = vsyncpa [#allocation5 + $0x1], 0  ;;  %s895_s15 = smov 0   ;;  %s897_s16 = smov 0  }
   0x6   :  { %s899_s17 = smov 0   ;;  %s901_s18 = smov 0  }
   0x7   :  { %s903_s19 = smov 0   ;;  %s905_s20 = smov 0  }
   0x8 LB: > { %s598_s21 = sadd.s32 4294967295, %s858_s20   ;;  %s599_s22 = sadd.s32 4294967294, %s858_s20   ;;  %s858_s20 = sphi %s905_s20, %s23_s20   ;;  %s854_s19 = sphi %s903_s19, %s1145_s19   ;;  %s850_s18 = sphi %s901_s18, %s1144_s18   ;;  %s846_s17 = sphi %s899_s17, %s1143_s17   ;;  %s842_s16 = sphi %s897_s16, %s1142_s16   ;;  %s838_s15 = sphi %s895_s15, %s1141_s15  }
   0x9   : > { %s42_s23 = sadd.s32 1, %s854_s19  ;;  %s53_s24 = sadd.s32 1, %s846_s17 }
   0xa   : > { %p44_p0 = scmp.ge.s32.totalorder %s42_s23, 2  ;;  %p60_p1 = scmp.ne.s32.totalorder %s846_s17, %s842_s16 }
   0xb   : > { %p61_p2 = scmp.eq.s32.totalorder %s858_s20, 0  ;;  %p66_p3 = scmp.ne.s32.totalorder %s842_s16, %s838_s15 }
   0xc   : > { %s1147_s23 = smov (%p44_p0, %s42_s23), 0  ;;  %p67_p5 = scmp.eq.s32.totalorder %s598_s21, 0 }
   0xd   : > { %p936_p4 = por %p61_p2, %p60_p1  ;;  %s46_s26 = ssub.s32 %s854_s19, %s1147_s23 }
   0xe   : > { %p178_p6 = scmp.eq.s32.totalorder %s598_s21, 1  ;;  %p51_p7 = scmp.eq.s32.totalorder %s46_s26, 0 }
   0xf   : > { %p942_p8 = por %p67_p5, %p66_p3  ;;  %p184_p10 = scmp.eq.s32.totalorder %s599_s22, 1 }
  0x10   : > { %p946_p9 = por %p178_p6, %p60_p1  ;;  %p653_p13 = scmp.lt.s32.totalorder %s858_s20, 2 }
  0x11   : > { %s1129_s27 = scalar_select %p942_p8, 1, 0 }
  0x12   : > { %s1130_s28 = scalar_select %p946_p9, 1, 0 }
  0x13   : > { %s951_s29 = scalar_select %p51_p7, %s846_s17, %s53_s24  }
  0x14   : > { %p953_p11 = por %p184_p10, %p66_p3  ;;  %s960_s5 = sand.u32 1, %s846_s17  }
  0x15   : > { %s604_s6 = sshll.u32 %s960_s5, 2  ;;  %s620_s7 = sshll.u32 %s854_s19, 7 }
  0x16   : > { %s1131_s30 = scalar_select %p953_p11, 1, 0 }
  0x17   : > { %s969_s10 = scalar_lea.hbm %s1121_s0, %s620_s7  ;;  %s222_s11 = scalar_lea.vmem [#allocation3], %s604_s6 }
  0x18   : > { %s233_s12 = sshll.u32 %s222_s11, 4  ;;  %p977_p0 = pnand %p653_p13, %p936_p4  ;;  %s973_s12 = int_to_ptr.vmem [resolvable:$true] %s233_s12 }
  0x19   : > { %s219_s14 = scalar_lea.sflag [#allocation4], %s960_s5  ;;  %s711_s21 = scalar_lea.hbm %s969_s10, 64 }
  0x1a   : > { %p712_p3 = scmp.ne.s32.totalorder %s969_s10, %s711_s21  ;;  %p713_p5 = pneg %p977_p0 }
  0x1b   : > { %s716_s25 = scalar_lea.hbm %s1121_s0, 256  ;;  %p717_p4 = scmp.lt.u32.totalorder %s969_s10, %s1121_s0 }
  0x1c   : > { %p714_p6 = pnand %p713_p5, %p712_p3  ;;  %p718_p10 = scmp.lt.u32.totalorder %s716_s25, %s711_s21 }
  0x1d   : > { %p720_p12 = scmp.lt.u32.totalorder %s711_s21, %s969_s10 }
  0x1e   : > { %p715_p7 = pneg %p714_p6  ;;  %p719_p13 = por %p718_p10, %p717_p4 }
  0x20   : > { %p721_p1 = por %p720_p12, %p719_p13 }
  0x22   : > { %p722_p2 = pnand %p721_p1, %p715_p7 }
  0x24   : > { %725 = shalt.err (!%p722_p2)
}
  0x25   : > { %s726_s9 = scalar_lea.vmem %s973_s12, 64  ;;  %s860_s11 = smov [#allocation3]  }
  0x26   : > { %p727_p3 = scmp.ne.s32.totalorder %s973_s12, %s726_s9  ;;  %s731_s22 = sshll.u32 %s860_s11, 4  ;;  %s732_s22 = int_to_ptr.vmem [resolvable:$false] %s731_s22 }
  0x27   : > { %s733_s24 = scalar_lea.vmem %s732_s22, 128  ;;  %p734_p9 = scmp.lt.s32.totalorder %s973_s12, %s732_s22 }
  0x28   : > { %p729_p6 = pnand %p727_p3, %p713_p5  ;;  %p735_p4 = scmp.lt.s32.totalorder %s733_s24, %s726_s9 }
  0x2a   : > { %p730_p11 = pneg %p729_p6  ;;  %p736_p10 = por %p735_p4, %p734_p9 }
  0x2c   : > { %p737_p12 = pnand %p736_p10, %p730_p11 }
  0x2e   : > { %740 = shalt.err (!%p737_p12)
}
  0x2f   : > { %645 = dma.hbm_to_vmem [thread:$0]  (!%p977_p0), %s969_s10, 64, %s973_s12, %s219_s14  }
  0x30   : > { %p1133_p1 = scmp.lt.s32.totalorder %s858_s20, 3  ;;  %p1134_p2 = scmp.ge.s32.totalorder %s858_s20, 1 }
  0x31   : > { %s501_s8 = scalar_lea.hbm %s1122_s1, %s620_s7  ;;  %s244_s9 = scalar_lea.vmem [#allocation6], %s604_s6 }
  0x32   : > { %p1013_p7 = pnand %p1134_p2, %p1133_p1  ;;  %s256_s11 = sshll.u32 %s244_s9, 4  ;;  %s257_s11 = int_to_ptr.vmem [resolvable:$true] %s256_s11 }
  0x33   : > { %s1024_s22 = scalar_lea.hbm %s501_s8, 64  ;;  %s241_s10 = scalar_lea.sflag [#allocation7], %s960_s5 }
  0x34   : > { %s1135_s21 = scalar_select %p1013_p7, 1, 0 }
  0x35   : > { %s771_s12 = scalar_lea.hbm %s501_s8, 128  ;;  %s746_s7 = scalar_lea.hbm %s1122_s1, 256 }
  0x36   : > { %p742_p9 = scmp.ne.s32.totalorder %s1024_s22, %s771_s12  ;;  %p747_p3 = scmp.lt.u32.totalorder %s1024_s22, %s1122_s1 }
  0x37   : > { %p748_p6 = scmp.lt.u32.totalorder %s746_s7, %s771_s12  ;;  %p750_p10 = scmp.lt.u32.totalorder %s771_s12, %s1024_s22 }
  0x38   : > { %p744_p11 = pnand %p742_p9, %p713_p5 }
  0x39   : > { %p749_p4 = por %p748_p6, %p747_p3 }
  0x3a   : > { %p745_p13 = pneg %p744_p11 }
  0x3b   : > { %p751_p12 = por %p750_p10, %p749_p4 }
  0x3d   : > { %p752_p1 = pnand %p751_p12, %p745_p13 }
  0x3f   : > { %755 = shalt.err (!%p752_p1)
}
  0x40   : > { %s756_s5 = scalar_lea.vmem %s257_s11, 64  ;;  %s861_s26 = smov [#allocation6]  }
  0x41   : > { %p757_p2 = scmp.ne.s32.totalorder %s257_s11, %s756_s5  ;;  %s761_s8 = sshll.u32 %s861_s26, 4  ;;  %s762_s8 = int_to_ptr.vmem [resolvable:$false] %s761_s8 }
  0x42   : > { %s763_s9 = scalar_lea.vmem %s762_s8, 128  ;;  %p764_p8 = scmp.lt.s32.totalorder %s257_s11, %s762_s8 }
  0x43   : > { %p759_p9 = pnand %p757_p2, %p713_p5  ;;  %p765_p7 = scmp.lt.s32.totalorder %s763_s9, %s756_s5 }
  0x45   : > { %p760_p11 = pneg %p759_p9  ;;  %p766_p3 = por %p765_p7, %p764_p8 }
  0x47   : > { %p767_p6 = pnand %p766_p3, %p760_p11 }
  0x49   : > { %770 = shalt.err (!%p767_p6)
}
  0x4a   : > { %648 = dma.hbm_to_vmem [thread:$0]  (!%p977_p0), %s1024_s22, 64, %s257_s11, %s241_s10  }
  0x4b   : > { %p1136_p13 = scmp.ne.s32.totalorder %s1135_s21, 0 }
  0x4c   : > { %s1048_s12 = sand.u32 (!%p1136_p13), 1, %s842_s16   ;;  %p1137_p5 = scmp.ne.s32.totalorder (!%p1136_p13), %s1129_s27, 0 }
  0x4d   : > { %265 = sbr.rel (%p1136_p13) target bundleno = 450 (0x1c2), region = 36  ;;  %s611_s14 = sshll.u32 (!%p1136_p13), %s1048_s12, 2 }
  0x4e   : > { %s268_s24 = scalar_lea.sflag (!%p1136_p13), [#allocation4], %s1048_s12  ;;  %s271_s7 = scalar_lea.vmem (!%p1136_p13), [#allocation3], %s611_s14 }
  0x54   : > { %825 = dma.done.wait (%p1137_p5), %s268_s24, 64  }
  0x55   : > { %827 = vsyncadd (%p1137_p5), %s268_s24, 4294967232  ;;  %s277_s13 = scalar_lea.sflag [#allocation7], %s1048_s12  ;;  %s280_s11 = scalar_lea.vmem [#allocation6], %s611_s14 }
  0x56   : > { %829 = dma.done.wait (%p1137_p5), %s277_s13, 64  }
  0x57   : > { %831 = vsyncadd (%p1137_p5), %s277_s13, 4294967232  ;;  %v862_v0 = vmov 0.0|0.0   ;;  %v340_v1 = vld [vmem:[%s271_s7] sm:$0xf]  ;;  %s863_s21 = smov 126   ;;  %s864_s22 = smov 127   ;;  %v327_v9 = vlaneseq }
  0x58   : > { %632 = vmatprep.subr.bf16.mxu0 %v862_v0  ;;  %v331_v2 = vld [vmem:[%s271_s7] sm:$0xf]  ;;  %342 = vrot.lane.b32.xlu1 %v340_v1, %s863_s21  ;;  %v341_v4 = vld [vmem:[%s280_s11] sm:$0xf]  ;;  %vm865_vm0 = vmmov 0   ;;  %v866_v6 = vmov 0.0  }
  0x59   : > { %333 = vrot.lane.b32.xlu0 %v331_v2, %s864_s22  ;;  %v329_v3 = vld [vmem:[%s271_s7] sm:$0xf]  ;;  %v332_v5 = vld [vmem:[%s280_s11] sm:$0xf]  ;;  %629 = vmatprep.mubr.msk.f32.mxu0 %vm865_vm0, %v866_v6  ;;  %v352_v7 = vld [vmem:[%s1124_s3] sm:$0xff]  ;;  %v867_v8 = vmov 0  }
  0x5a   : > { %330 = vst [vmem:[#allocation2] sm:$0xf] %v329_v3  ;;  %710 = vset.pattern.permute.xlu0 %v867_v8  ;;  %v328_v10 = vand.u32 127, %v327_v9  ;;  %vm362_vm3 = vcmask 1043456   ;;  %vm868_vm4 = vmmov 1   ;;  %v349_v20 = vld [vmem:[%s1123_s2] sm:$0xff] }
  0x5b   : > { %vm634_vm5 = vmpackc.low %vm362_vm3, %vm868_vm4  ;;  %vm358_vm6 = vcmask 97280   ;;  %s613_s5 = sshll.u32 %s1048_s12, 3  ;;  %s617_s26 = sshll.u32 %s850_s18, 7 }
  0x5c   : > { %344 = vrot.lane.b32.xlu1 %v341_v4, %s863_s21  ;;  %vm346_vm1 = vcmp.ge.s32.totalorder %v328_v10, 126  ;;  %vm337_vm2 = vcmp.ge.s32.totalorder %v328_v10, 127  ;;  %s317_s8 = scalar_lea.vmem [#allocation8], %s613_s5  ;;  %s1072_s7 = scalar_lea.hbm %s1125_s4, %s617_s26 }
  0x5d   : > { %335 = vrot.lane.b32.xlu0 %v332_v5, %s864_s22  ;;  %s453_s9 = sshll.u32 %s317_s8, 4  ;;  %s438_s13 = scalar_lea.sflag [#allocation5], %s1048_s12  ;;  %s1074_s9 = int_to_ptr.vmem [resolvable:$true] %s453_s9 }
  0x5e   : > { %s772_s11 = scalar_lea.vmem %s1074_s9, 128  ;;  %p1138_p0 = scmp.ne.s32.totalorder %s1130_s28, 0 }
  0x5f   : > { %p773_p8 = scmp.ne.s32.totalorder %s1074_s9, %s772_s11  ;;  %s869_s18 = smov [#allocation8]  }
  0x60   : > { %s776_s21 = sshll.u32 %s869_s18, 4  ;;  %s777_s21 = int_to_ptr.vmem [resolvable:$false] %s776_s21 }
  0x61   : > { %355 = vperm.xlu0 %710, %v352_v7   ;;  %p774_p7 = pnand %p773_p8, %p1138_p0  ;;  %s778_s22 = scalar_lea.vmem %s777_s21, 256 }
  0x62   : > { %p779_p10 = scmp.lt.s32.totalorder %s1074_s9, %s777_s21  ;;  %p780_p12 = scmp.lt.s32.totalorder %s778_s22, %s772_s11 }
  0x63   : > { %p775_p4 = pneg %p774_p7 }
  0x64   : > { %p781_p1 = por %p780_p12, %p779_p10 }
  0x66   : > { %p782_p2 = pnand %p781_p1, %p775_p4 }
  0xca   : > { %v343_v11 = vpop.permute.xlu1 %342 }
  0xcb   : > { %v334_v12 = vpop.permute.xlu0 %333 }
  0xce   : > { %v345_v13 = vpop.permute.xlu1 %344 }
  0xcf   : > { %v336_v14 = vpop.permute.xlu0 %335  ;;  %v347_v15 = vsel %vm346_vm1, %v345_v13, %v343_v11 }
  0xd0   : > { %v338_v16 = vsel %vm337_vm2, %v336_v14, %v334_v12  ;;  %348 = vst [vmem:[#allocation2 + $0x8] sm:$0xf] %v347_v15 }
  0xd1   : > { %339 = vst [vmem:[#allocation2 + $0x4] sm:$0xf] %v338_v16 }
  0xd7   : > { %v351_v18 = vld [vmem:[#allocation2 + $0x8] sm:$0xf] }
  0xd8   : > { %v350_v17 = vld [vmem:[#allocation2] sm:$0xff] }
  0xd9   : > { %v633_v19 = vpack.c.bf16 %v351_v18, %v350_v17 }
  0xdb   : > { %635 = vmatpush3.bf16.msk.msra.mxu0 %vm634_vm5, %v633_v19 }
  0xde   : > { %630 = vmatmul.mubr.msk.f32.vlgmr.msra.gmra.mrb[0].mxu0 %vm358_vm6, %v349_v20 }
  0xe0   : > { %v356_v21 = vpop.permute.xlu0 %355 }
 0x1b1   : > { %v432_v22 = vpop.f32.mrb[0].mxu0 }
 0x1b2   : > { %v433_v23 = vadd.f32 %v432_v22, %v356_v21  ;;  %v631_v24 = vpop.f32.mrb[1].mxu0 }
 0x1b4   : > { %436 = vst [vmem:[%s317_s8] sm:$0xff] %v433_v23 }
 0x1b5   : > { %785 = shalt.err (!%p782_p2)
}
 0x1b6   : > { %s786_s12 = scalar_lea.hbm %s1072_s7, 128  ;;  %s790_s25 = scalar_lea.hbm %s1125_s4, 256 }
 0x1b7   : > { %p787_p9 = scmp.ne.s32.totalorder %s1072_s7, %s786_s12  ;;  %p791_p6 = scmp.lt.u32.totalorder %s1072_s7, %s1125_s4 }
 0x1b8   : > { %p792_p13 = scmp.lt.u32.totalorder %s790_s25, %s786_s12  ;;  %p794_p8 = scmp.lt.u32.totalorder %s786_s12, %s1072_s7 }
 0x1b9   : > { %p788_p11 = pnand %p787_p9, %p1138_p0 }
 0x1ba   : > { %p793_p5 = por %p792_p13, %p791_p6 }
 0x1bb   : > { %p789_p3 = pneg %p788_p11 }
 0x1bc   : > { %p795_p7 = por %p794_p8, %p793_p5 }
 0x1be   : > { %p796_p4 = pnand %p795_p7, %p789_p3 }
 0x1c0   : > { %799 = shalt.err (!%p796_p4)
}
 0x1c1   : > { %640 = dma.vmem_to_hbm [thread:$0]  (%p1138_p0), %s1074_s9, 128, %s1072_s7, %s438_s13  }
 0x1c2 PF: > { %s465_s26 = sand.u32 1, %s838_s15   ;;  %p1139_p10 = scmp.ne.s32.totalorder %s1131_s30, 0 }
 0x1c3   : > { %p1140_p12 = scmp.ge.s32.totalorder %s858_s20, 2  ;;  %s466_s8 = scalar_lea.sflag [#allocation5], %s465_s26 }
 0x1c5   : > { %p650_p1 = pnand %p1140_p12, %p1139_p10 }
 0x1c7   : > { %833 = dma.done.wait (!%p650_p1), %s466_s8, 128  }
 0x1c8   : > { %835 = vsyncadd (!%p650_p1), %s466_s8, 4294967168  ;;  %s23_s20 = sadd.s32 1, %s858_s20   ;;  %s1141_s15 = smov %s842_s16 }
 0x1c9   : > { %p20_p2 = scmp.ge.s32.totalorder %s23_s20, 4   ;;  %s1142_s16 = smov %s846_s17 }
 0x1ca   : > { %s1143_s17 = smov %s951_s29  ;;  %s1144_s18 = smov %s854_s19 }
 0x1cb   : > { %s1145_s19 = smov %s1147_s23  ;;  %22 = sbr.rel (!%p20_p2) target bundleno = 8 (0x8), region = 100 }
 0x1d2   :  { %471 = vsyncpa [#allocation4], 1 }
 0x1d3   :  { %473 = vsyncpa [#allocation4 + $0x1], 1 }
 0x1d4   :  { %474 = vsyncpa [#allocation7], 1 }
 0x1d5   :  { %476 = vsyncpa [#allocation7 + $0x1], 1 }
 0x1d6   :  { %477 = vsyncpa [#allocation5], 1 }
 0x1d7   :  { %479 = vsyncpa [#allocation5 + $0x1], 1 }

</bundles_post_ra>
